<compile_context>
chip_gen: v7x
topology: tpu7x:2x2x1
jax: 0.10.0
libtpu: 0.0.40
codegen_flags: <defaults>
</compile_context>

<pallas_src>
import functools

import jax
import jax.numpy as jnp
from jax import lax
from jax.experimental import pallas as pl
from jax.experimental.pallas import tpu as pltpu

NUM_CLASSES = 21


def _pick_row_group(m: int) -> int:
    """Largest R in {6..1} dividing M -> 21*R lanes per super-row (<=126)."""
    for r in (6, 5, 4, 3, 2, 1):
        if m % r == 0:
            return r
    return 1


def _wce_kernel(pred_ref, tgt_ref, w_ref, out_ref, *, n_super, steps):
    """One (TM_s, 21*R) tile of super-rows (R original rows packed on lanes).

    pred_ref: (TM_s, 21*R) logits, native dtype (cast to f32 in VMEM)
    tgt_ref : (TM_s, R)    int32 class ids
    w_ref   : (TM_s, R)    f32 per-row weights
    out_ref : (TM_s, R)    f32 per-row weighted NLL, accumulated across axis 1
    """
    s_id = pl.program_id(0)          # parallel split axis
    i = pl.program_id(1)             # reduction (row-chunk) axis

    @pl.when(i == 0)
    def _():
        out_ref[...] = jnp.zeros_like(out_ref)

    tm_s, lanes = pred_ref.shape
    r = tgt_ref.shape[1]
    c = NUM_CLASSES

    # Row (super-row) validity: masks the grid's tail block and any block that
    # was redirected in-bounds by the clamping index_map.
    start = (s_id * steps + i) * tm_s
    valid = start + lax.broadcasted_iota(jnp.int32, (tm_s, 1), 0) < n_super

    x = pred_ref[...].astype(jnp.float32)             # (TM_s, 21R), f32 math
    x = jnp.where(valid, x, 0.0)                      # garbage rows -> benign

    # Constant 0/1 segment matrices (built from iota; a couple of vregs).
    #   seg_sum[l, k]   = 1  iff lane l belongs to row-segment k   (lanes -> R)
    #   seg_bcast[k, l] = 1  iff lane l belongs to row-segment k   (R -> lanes)
    llc = lax.broadcasted_iota(jnp.int32, (lanes, r), 0)
    kkc = lax.broadcasted_iota(jnp.int32, (lanes, r), 1)
    seg_sum = jnp.logical_and(llc >= kkc * c, llc < (kkc + 1) * c).astype(jnp.float32)
    kkr = lax.broadcasted_iota(jnp.int32, (r, lanes), 0)
    llr = lax.broadcasted_iota(jnp.int32, (r, lanes), 1)
    seg_bcast = jnp.logical_and(llr >= kkr * c, llr < (kkr + 1) * c).astype(jnp.float32)

    # Numerically stable log-sum-exp, shift = max over the R-row group.
    m = jnp.max(x, axis=-1, keepdims=True)            # (TM_s, 1)  one XLU reduce
    e = jnp.exp(x - m)                                 # (TM_s, 21R) lane-dense EUP

    # Per-row sum(exp) via MXU segment-sum (idle unit -> ~free).
    s_seg = jnp.dot(e, seg_sum, preferred_element_type=jnp.float32)      # (TM_s, R)
    s_seg = jnp.maximum(s_seg, 1e-30)                  # guard log(0) for extreme spreads

    # Target logit: broadcast target to its absolute lane via MXU, one-hot
    # select, MXU segment-sum.
    tgt_abs = tgt_ref[...] + c * lax.broadcasted_iota(jnp.int32, tgt_ref.shape, 1)
    tgt_b = jnp.dot(tgt_abs.astype(jnp.float32), seg_bcast,
                    preferred_element_type=jnp.float32)                  # (TM_s, 21R)
    lane_idx = lax.broadcasted_iota(jnp.int32, (tm_s, lanes), 1)
    onehot = (lane_idx == tgt_b.astype(jnp.int32)).astype(jnp.float32)
    picked = jnp.dot(x * onehot, seg_sum, preferred_element_type=jnp.float32)  # (TM_s, R)

    # Weighted NLL per row; invalid rows contribute exactly 0 (where, not *0).
    loss = (m + jnp.log(s_seg) - picked) * w_ref[...].astype(jnp.float32)
    out_ref[...] += jnp.where(valid, loss, 0.0)


def get_loss_pallas(predict, target, weights, *, target_rows_per_tile=6144):
    """predict: (B, N, 21) float; target: (B, N) int; weights: (B, N) float."""
    B, N, C = predict.shape
    assert C == NUM_CLASSES
    M = B * N

    r = _pick_row_group(M)       # rows packed per super-row
    lanes = C * r                # <= 126
    S = M // r                   # number of super-rows

    # Free, contiguous (bitcast) reshapes only — no pad / slice / concat passes.
    pred2d = predict.reshape(S, lanes)                    # native dtype
    tgt2d = target.reshape(S, r).astype(jnp.int32)
    w2d = weights.reshape(S, r).astype(jnp.float32)

    num_splits = 2 if S >= 64 else 1
    per_split = pl.cdiv(S, num_splits)
    tm_s = min(max(target_rows_per_tile // r, 16), per_split)
    tm_s = ((tm_s + 15) // 16) * 16                        # bf16-safe sublane count
    steps = pl.cdiv(S, num_splits * tm_s)
    last_block = pl.cdiv(S, tm_s) - 1                      # last in-bounds block index

    def in_map(s, i):
        # Clamp fully out-of-bounds block indices in-bounds; the kernel's
        # logical-index validity mask zeroes any redirected / tail rows.
        return (jnp.minimum(s * steps + i, last_block), 0)

    kernel = functools.partial(_wce_kernel, n_super=S, steps=steps)

    partial = pl.pallas_call(
        kernel,
        out_shape=jax.ShapeDtypeStruct((num_splits * tm_s, r), jnp.float32),
        grid_spec=pltpu.PrefetchScalarGridSpec(
            num_scalar_prefetch=0,
            grid=(num_splits, steps),
            in_specs=[
                pl.BlockSpec((tm_s, lanes), in_map),
                pl.BlockSpec((tm_s, r), in_map),
                pl.BlockSpec((tm_s, r), in_map),
            ],
            # Output block depends only on the split index -> stays VMEM-resident
            # across the reduction axis and acts as the (vector) accumulator.
            out_specs=pl.BlockSpec((tm_s, r), lambda s, i: (s, 0)),
        ),
        compiler_params=pltpu.CompilerParams(
            dimension_semantics=("parallel", "arbitrary"),
        ),
    )(pred2d, tgt2d, w2d)

    # Single tiny reduce + divide by the true element count (mean over B*N rows).
    return jnp.sum(partial, dtype=jnp.float32) / jnp.float32(M)


def get_loss_ref(predict, target, weights):
    """Pure-JAX reference identical to the PyTorch module."""
    B, N, C = predict.shape
    logits = predict.reshape(-1, C).astype(jnp.float32)
    tgt = target.reshape(-1).astype(jnp.int32)
    w = weights.reshape(-1).astype(jnp.float32)
    logp = jax.nn.log_softmax(logits, axis=-1)
    nll = -jnp.take_along_axis(logp, tgt[:, None], axis=-1)[:, 0]
    return jnp.mean(nll * w)


if __name__ == "__main__":
    key = jax.random.PRNGKey(0)

    def run_case(B, N, dtype):
        k1, k2, k3 = jax.random.split(jax.random.fold_in(key, B * 1000 + N), 3)
        predict = jax.random.normal(k1, (B, N, NUM_CLASSES), dtype=jnp.float32).astype(dtype)
        target = jax.random.randint(k2, (B, N), 0, NUM_CLASSES, dtype=jnp.int32)
        weights = jax.random.uniform(k3, (B, N), dtype=jnp.float32)
        out = get_loss_pallas(predict, target, weights)
        jax.block_until_ready(out)
        ref = get_loss_ref(predict, target, weights)
        assert jnp.allclose(out, ref, rtol=1e-4, atol=1e-4), (B, N, str(dtype), out, ref)

    run_case(2, 64, jnp.float32)    # M=128 -> R=4 (84-lane super-rows)
    run_case(3, 70, jnp.float32)    # M=210 -> R=6 (126 lanes) + partial-tile masking
    run_case(1, 45, jnp.float32)    # M=45  -> R=5 + partial tile
    run_case(2, 64, jnp.bfloat16)   # native-dtype (bf16) logits path
    print("KERNEL_OK")
</pallas_src>

<mosaic_0001>
module attributes {stable_mosaic.version = 11 : i64} {
  func.func @_wce_kernel(%arg0: i32, %arg1: i32, %arg2: memref<32x84xf32, #tpu.memory_space<vmem>>, %arg3: memref<32x4xi32, #tpu.memory_space<vmem>>, %arg4: memref<32x4xf32, #tpu.memory_space<vmem>>, %arg5: memref<32x4xf32, #tpu.memory_space<vmem>>) attributes {dimension_semantics = [#tpu.dimension_semantics<parallel>, #tpu.dimension_semantics<arbitrary>], iteration_bounds = array<i64: 1, 1>, scalar_prefetch = 0 : i64, scratch_operands = 0 : i64, tpu.core_type = #tpu.core_type<tc>, window_params = [{transform_indices = @transform_0, window_bounds = array<i64: 32, 84>}, {transform_indices = @transform_1, window_bounds = array<i64: 32, 4>}, {transform_indices = @transform_2, window_bounds = array<i64: 32, 4>}, {transform_indices = @transform_3, window_bounds = array<i64: 32, 4>}]} {
    %c0_i32 = arith.constant 0 : i32
    %0 = arith.cmpi eq, %arg1, %c0_i32 : i32
    %1 = arith.extui %0 : i1 to i32
    %c0_i32_0 = arith.constant 0 : i32
    %2 = arith.cmpi ne, %1, %c0_i32_0 : i32
    scf.if %2 {
      %cst_23 = arith.constant 0.000000e+00 : f32
      %77 = vector.broadcast %cst_23 : f32 to vector<32x4xf32>
      %c0_24 = arith.constant 0 : index
      %c0_25 = arith.constant 0 : index
      %78 = vector.load %arg5[%c0_24, %c0_25] : memref<32x4xf32, #tpu.memory_space<vmem>>, vector<32x4xf32>
      tpu.vector_store %arg5[%c0_24, %c0_25], %77 {strides = array<i32>} : memref<32x4xf32, #tpu.memory_space<vmem>>, vector<32x4xf32>,
    } else {
    }
    %c1_i32 = arith.constant 1 : i32
    %3 = arith.muli %arg0, %c1_i32 : i32
    %4 = arith.addi %3, %arg1 : i32
    %c32_i32 = arith.constant 32 : i32
    %5 = arith.muli %4, %c32_i32 : i32
    %6 = tpu.iota {dimensions = array<i32: 0>} : vector<32x1xi32>
    %7 = vector.broadcast %5 : i32 to vector<32x1xi32>
    %8 = arith.addi %7, %6 : vector<32x1xi32>
    %c32_i32_1 = arith.constant 32 : i32
    %9 = vector.broadcast %c32_i32_1 : i32 to vector<32x1xi32>
    %10 = arith.cmpi slt, %8, %9 : vector<32x1xi32>
    %c0 = arith.constant 0 : index
    %c0_2 = arith.constant 0 : index
    %11 = vector.load %arg2[%c0, %c0_2] : memref<32x84xf32, #tpu.memory_space<vmem>>, vector<32x84xf32>
    %cst = arith.constant 0.000000e+00 : f32
    %12 = vector.shape_cast %10 : vector<32x1xi1> to vector<32x1xi1>
    %13 = vector.broadcast %12 : vector<32x1xi1> to vector<32x84xi1>
    %14 = vector.broadcast %cst : f32 to vector<32x84xf32>
    %15 = arith.select %13, %11, %14 : vector<32x84xi1>, vector<32x84xf32>
    %16 = tpu.iota {dimensions = array<i32: 0>} : vector<84x4xi32>
    %17 = tpu.iota {dimensions = array<i32: 1>} : vector<84x4xi32>
    %c21_i32 = arith.constant 21 : i32
    %18 = vector.broadcast %c21_i32 : i32 to vector<84x4xi32>
    %19 = arith.muli %17, %18 : vector<84x4xi32>
    %20 = arith.cmpi sge, %16, %19 : vector<84x4xi32>
    %c1_i32_3 = arith.constant 1 : i32
    %21 = vector.broadcast %c1_i32_3 : i32 to vector<84x4xi32>
    %22 = arith.addi %17, %21 : vector<84x4xi32>
    %c21_i32_4 = arith.constant 21 : i32
    %23 = vector.broadcast %c21_i32_4 : i32 to vector<84x4xi32>
    %24 = arith.muli %22, %23 : vector<84x4xi32>
    %25 = arith.cmpi slt, %16, %24 : vector<84x4xi32>
    %26 = arith.andi %20, %25 : vector<84x4xi1>
    %27 = arith.extui %26 : vector<84x4xi1> to vector<84x4xi32>
    %28 = arith.sitofp %27 : vector<84x4xi32> to vector<84x4xf32>
    %29 = tpu.iota {dimensions = array<i32: 0>} : vector<4x84xi32>
    %30 = tpu.iota {dimensions = array<i32: 1>} : vector<4x84xi32>
    %c21_i32_5 = arith.constant 21 : i32
    %31 = vector.broadcast %c21_i32_5 : i32 to vector<4x84xi32>
    %32 = arith.muli %29, %31 : vector<4x84xi32>
    %33 = arith.cmpi sge, %30, %32 : vector<4x84xi32>
    %c1_i32_6 = arith.constant 1 : i32
    %34 = vector.broadcast %c1_i32_6 : i32 to vector<4x84xi32>
    %35 = arith.addi %29, %34 : vector<4x84xi32>
    %c21_i32_7 = arith.constant 21 : i32
    %36 = vector.broadcast %c21_i32_7 : i32 to vector<4x84xi32>
    %37 = arith.muli %35, %36 : vector<4x84xi32>
    %38 = arith.cmpi slt, %30, %37 : vector<4x84xi32>
    %39 = arith.andi %33, %38 : vector<4x84xi1>
    %40 = arith.extui %39 : vector<4x84xi1> to vector<4x84xi32>
    %41 = arith.sitofp %40 : vector<4x84xi32> to vector<4x84xf32>
    %cst_8 = arith.constant dense<0xFF800000> : vector<32xf32>
    %42 = vector.multi_reduction <maximumf>, %15, %cst_8 [1] : vector<32x84xf32> to vector<32xf32>
    %43 = vector.shape_cast %42 : vector<32xf32> to vector<32x1xf32>
    %44 = vector.broadcast %43 : vector<32x1xf32> to vector<32x84xf32>
    %45 = arith.subf %15, %44 : vector<32x84xf32>
    %46 = math.exp %45 : vector<32x84xf32>
    %cst_9 = arith.constant dense<0.000000e+00> : vector<32x4xf32>
    %47 = tpu.matmul %46, %28, %cst_9 {dimension_numbers = #tpu.dot_dimension_numbers<[1], [0], [0], [1], [0, 0, 1, 1], [], []>} : vector<32x84xf32>, vector<84x4xf32>, vector<32x4xf32> -> vector<32x4xf32>
    %cst_10 = arith.constant 1.000000e-30 : f32
    %48 = vector.broadcast %cst_10 : f32 to vector<32x4xf32>
    %49 = arith.maximumf %47, %48 : vector<32x4xf32>
    %c0_11 = arith.constant 0 : index
    %c0_12 = arith.constant 0 : index
    %50 = vector.load %arg3[%c0_11, %c0_12] : memref<32x4xi32, #tpu.memory_space<vmem>>, vector<32x4xi32>
    %51 = tpu.iota {dimensions = array<i32: 1>} : vector<32x4xi32>
    %c21_i32_13 = arith.constant 21 : i32
    %52 = vector.broadcast %c21_i32_13 : i32 to vector<32x4xi32>
    %53 = arith.muli %52, %51 : vector<32x4xi32>
    %54 = arith.addi %50, %53 : vector<32x4xi32>
    %55 = arith.sitofp %54 : vector<32x4xi32> to vector<32x4xf32>
    %cst_14 = arith.constant dense<0.000000e+00> : vector<32x84xf32>
    %56 = tpu.matmul %55, %41, %cst_14 {dimension_numbers = #tpu.dot_dimension_numbers<[1], [0], [0], [1], [0, 0, 1, 1], [], []>} : vector<32x4xf32>, vector<4x84xf32>, vector<32x84xf32> -> vector<32x84xf32>
    %57 = tpu.iota {dimensions = array<i32: 1>} : vector<32x84xi32>
    %58 = arith.fptosi %56 : vector<32x84xf32> to vector<32x84xi32>
    %59 = arith.cmpi eq, %57, %58 : vector<32x84xi32>
    %60 = arith.extui %59 : vector<32x84xi1> to vector<32x84xi32>
    %61 = arith.sitofp %60 : vector<32x84xi32> to vector<32x84xf32>
    %62 = arith.mulf %15, %61 : vector<32x84xf32>
    %cst_15 = arith.constant dense<0.000000e+00> : vector<32x4xf32>
    %63 = tpu.matmul %62, %28, %cst_15 {dimension_numbers = #tpu.dot_dimension_numbers<[1], [0], [0], [1], [0, 0, 1, 1], [], []>} : vector<32x84xf32>, vector<84x4xf32>, vector<32x4xf32> -> vector<32x4xf32>
    %64 = math.log %49 : vector<32x4xf32>
    %65 = vector.broadcast %43 : vector<32x1xf32> to vector<32x4xf32>
    %66 = arith.addf %65, %64 : vector<32x4xf32>
    %67 = arith.subf %66, %63 : vector<32x4xf32>
    %c0_16 = arith.constant 0 : index
    %c0_17 = arith.constant 0 : index
    %68 = vector.load %arg4[%c0_16, %c0_17] : memref<32x4xf32, #tpu.memory_space<vmem>>, vector<32x4xf32>
    %69 = arith.mulf %67, %68 : vector<32x4xf32>
    %c0_18 = arith.constant 0 : index
    %c0_19 = arith.constant 0 : index
    %70 = vector.load %arg5[%c0_18, %c0_19] : memref<32x4xf32, #tpu.memory_space<vmem>>, vector<32x4xf32>
    %cst_20 = arith.constant 0.000000e+00 : f32
    %71 = vector.shape_cast %10 : vector<32x1xi1> to vector<32x1xi1>
    %72 = vector.broadcast %71 : vector<32x1xi1> to vector<32x4xi1>
    %73 = vector.broadcast %cst_20 : f32 to vector<32x4xf32>
    %74 = arith.select %72, %69, %73 : vector<32x4xi1>, vector<32x4xf32>
    %75 = arith.addf %70, %74 : vector<32x4xf32>
    %c0_21 = arith.constant 0 : index
    %c0_22 = arith.constant 0 : index
    %76 = vector.load %arg5[%c0_21, %c0_22] : memref<32x4xf32, #tpu.memory_space<vmem>>, vector<32x4xf32>
    tpu.vector_store %arg5[%c0_21, %c0_22], %75 {strides = array<i32>} : memref<32x4xf32, #tpu.memory_space<vmem>>, vector<32x4xf32>,
    return
  }
  func.func @transform_0(%arg0: i32, %arg1: i32) -> (i32, i32) {
    %c1_i32 = arith.constant 1 : i32
    %0 = arith.muli %arg0, %c1_i32 : i32
    %1 = arith.addi %0, %arg1 : i32
    %c0_i32 = arith.constant 0 : i32
    %2 = arith.minsi %1, %c0_i32 : i32
    %c0_i32_0 = arith.constant 0 : i32
    %c0_i32_1 = arith.constant 0 : i32
    return %2, %c0_i32_0 : i32, i32
  }
  func.func @transform_1(%arg0: i32, %arg1: i32) -> (i32, i32) {
    %c1_i32 = arith.constant 1 : i32
    %0 = arith.muli %arg0, %c1_i32 : i32
    %1 = arith.addi %0, %arg1 : i32
    %c0_i32 = arith.constant 0 : i32
    %2 = arith.minsi %1, %c0_i32 : i32
    %c0_i32_0 = arith.constant 0 : i32
    %c0_i32_1 = arith.constant 0 : i32
    return %2, %c0_i32_0 : i32, i32
  }
  func.func @transform_2(%arg0: i32, %arg1: i32) -> (i32, i32) {
    %c1_i32 = arith.constant 1 : i32
    %0 = arith.muli %arg0, %c1_i32 : i32
    %1 = arith.addi %0, %arg1 : i32
    %c0_i32 = arith.constant 0 : i32
    %2 = arith.minsi %1, %c0_i32 : i32
    %c0_i32_0 = arith.constant 0 : i32
    %c0_i32_1 = arith.constant 0 : i32
    return %2, %c0_i32_0 : i32, i32
  }
  func.func @transform_3(%arg0: i32, %arg1: i32) -> (i32, i32) {
    %c0_i32 = arith.constant 0 : i32
    %c0_i32_0 = arith.constant 0 : i32
    return %arg0, %c0_i32 : i32, i32
  }
}

</mosaic_0001>

<bundles_post_ra>
// kernel: tpu_custom_call.1
= control target key start
LH: loop header
LB: loop body
LE: loop exit
PB: predicated region body
PF: predicated region fallthrough
CT: control target
= control target key end

     0   :  { %vm226_vm0 = vcmask 687104   ;;  %v121_v0 = vlaneseq  ;;  %vm263_vm2 = vcmask 1043456   ;;  %vm114_vm4 = vcmask 31744   ;;  %s1128_s0 = inlined_call_operand.vmem [shape: f32[32,84], index: 0, kind: input, shape index: {}]   ;;  %s1129_s1 = inlined_call_operand.vmem [shape: s32[32,4], index: 1, kind: input, shape index: {}]   ;;  %s1130_s3 = inlined_call_operand.vmem [shape: f32[32,4], index: 3, kind: output, shape index: {}]   ;;  %s1131_s2 = inlined_call_operand.vmem [shape: f32[32,4], index: 2, kind: input, shape index: {}]  }
   0x1   :  { %v889_v1 = vld [vmem:[%s1128_s0] sm:$0xff]  ;;  %v894_v2 = vld [vmem:[%s1128_s0 + $0x10] sm:$0xff]  ;;  %v899_v3 = vld [vmem:[%s1128_s0 + $0x8] sm:$0xff]  ;;  %v864_v29 = vmov 0.0   ;;  %v865_v34 = vmov 1.0|1.0  }
   0x2   :  { %v227_v4 = vsel %vm226_vm0, %v889_v1, -inf  ;;  %v233_v5 = vsel %vm226_vm0, %v894_v2, -inf  ;;  %v905_v6 = vshrl.u32 %v121_v0, 7  ;;  %v910_v7 = vld [vmem:[%s1128_s0 + $0x18] sm:$0xff]  ;;  %v230_v8 = vsel %vm226_vm0, %v899_v3, -inf  ;;  %v356_v10 = vld [vmem:[%s1129_s1] sm:$0xff] }
   0x3   :  { %228 = vmax.xlane.f32.xlu0 %v227_v4  ;;  %234 = vmax.xlane.f32.xlu1 %v233_v5  ;;  %v914_v9 = vand.u32 127, %v121_v0  ;;  %v236_v13 = vsel %vm226_vm0, %v910_v7, -inf  ;;  %v357_v14 = vld [vmem:[%s1129_s1 + $0x8] sm:$0xff]  ;;  %v358_v15 = vld [vmem:[%s1129_s1 + $0x10] sm:$0xff]  ;;  %v359_v21 = vld [vmem:[%s1129_s1 + $0x18] sm:$0xff]  ;;  %116 = vst.msk [vmem:[%s1130_s3 + $0x8] sm:$0xff] %vm114_vm4, %v864_v29 }
   0x4   :  { %v218_v11 = vmul.u32 21, %v905_v6  ;;  %v220_v12 = vadd.s32 1, %v905_v6  ;;  %v123_v16 = vadd.s32 8, %v905_v6  ;;  %v124_v35 = vadd.s32 16, %v905_v6  ;;  %115 = vst.msk [vmem:[%s1130_s3] sm:$0xff] %vm114_vm4, %v864_v29  ;;  %117 = vst.msk [vmem:[%s1130_s3 + $0x10] sm:$0xff] %vm114_vm4, %v864_v29 }
   0x5   :  { %v931_v17 = vmul.u32 21, %v914_v9  ;;  %v172_v18 = vadd.s32 1, %v914_v9  ;;  %v125_v36 = vadd.s32 24, %v905_v6  ;;  %v151_v37 = vadd.s32 32, %v905_v6  ;;  %118 = vst.msk [vmem:[%s1130_s3 + $0x18] sm:$0xff] %vm114_vm4, %v864_v29 }
   0x6   :  { %vm935_vm1 = vcmp.ge.s32.totalorder %v914_v9, %v218_v11  ;;  %v221_v20 = vmul.u32 21, %v220_v12  ;;  %v152_v38 = vadd.s32 40, %v905_v6  ;;  %v153_v39 = vadd.s32 48, %v905_v6 }
   0x7   :  { %231 = vmax.xlane.f32.xlu0 %v230_v8  ;;  %237 = vmax.xlane.f32.xlu1 %v236_v13  ;;  %v360_v22 = vadd.s32 %v356_v10, %v931_v17  ;;  %v361_v23 = vadd.s32 %v357_v14, %v931_v17  ;;  %v362_v24 = vadd.s32 %v358_v15, %v931_v17  ;;  %v945_v25 = vmul.u32 21, %v172_v18 }
   0x8   :  { %vm222_vm3 = vcmp.lt.s32.totalorder %v914_v9, %v221_v20  ;;  %vm161_vm5 = vcmp.ge.s32.totalorder %v905_v6, %v931_v17  ;;  %vm162_vm6 = vcmp.ge.s32.totalorder %v123_v16, %v931_v17  ;;  %v363_v28 = vadd.s32 %v359_v21, %v931_v17 }
   0x9   :  { %vm223_vm7 = vmand %vm935_vm1, %vm222_vm3  ;;  %v364_v26 = vcvt.s32.f32 %v360_v22  ;;  %v365_v27 = vcvt.s32.f32 %v361_v23  ;;  %vm174_vm8 = vcmp.lt.s32.totalorder %v905_v6, %v945_v25  ;;  %v366_v31 = vcvt.s32.f32 %v362_v24 }
   0xa   :  { %v659_v30 = vsel %vm223_vm7, 1.0, %v864_v29  ;;  %vm175_vm9 = vcmp.lt.s32.totalorder %v123_v16, %v945_v25  ;;  %vm185_vm10 = vmand %vm161_vm5, %vm174_vm8  ;;  %v367_v33 = vcvt.s32.f32 %v363_v28  ;;  %vm163_vm13 = vcmp.ge.s32.totalorder %v124_v35, %v931_v17 }
   0xb   :  { %762 = vmatprep.subr.msk.mxu1 %vm263_vm2, %v659_v30  ;;  %764 = vmatprep.mubr.msk.f32.mxu1 %vm114_vm4, %v364_v26  ;;  %vm186_vm11 = vmand %vm162_vm6, %vm175_vm9  ;;  %vm164_vm14 = vcmp.ge.s32.totalorder %v125_v36, %v931_v17  ;;  %vm176_vm15 = vcmp.lt.s32.totalorder %v124_v35, %v945_v25  ;;  %vm177_vm1 = vcmp.lt.s32.totalorder %v125_v36, %v945_v25  ;;  %v154_v40 = vadd.s32 56, %v905_v6  ;;  %v603_v35 = vld [vmem:[%s1131_s2 + $0x8] sm:$0xff] }
   0xc   :  { %763 = vmatpush3.msk.msra.mxu1 %vm263_vm2, %v659_v30  ;;  %vm961_vm12 = vmpackc.low %vm186_vm11, %vm185_vm10  ;;  %vm165_vm7 = vcmp.ge.s32.totalorder %v151_v37, %v931_v17  ;;  %vm166_vm8 = vcmp.ge.s32.totalorder %v152_v38, %v931_v17  ;;  %vm178_vm9 = vcmp.lt.s32.totalorder %v151_v37, %v945_v25  ;;  %vm179_vm10 = vcmp.lt.s32.totalorder %v152_v38, %v945_v25 }
   0xd   :  { %765 = vmatmul.mubr.msk.f32.vlgmr.msra.gmra.mrb[0].mxu1 %vm114_vm4, %v365_v27  ;;  %799 = vmatprep.subr.msk.bf16.mxu0 %vm961_vm12, %v865_v34  ;;  %vm187_vm3 = vmand %vm163_vm13, %vm176_vm15  ;;  %vm168_vm15 = vcmp.ge.s32.totalorder %v154_v40, %v931_v17  ;;  %v155_v41 = vadd.s32 64, %v905_v6  ;;  %v156_v42 = vadd.s32 72, %v905_v6  ;;  %v157_v43 = vadd.s32 80, %v905_v6 }
   0xe   :  { %767 = vmatprep.mubr.msk.f32.mxu1 %vm114_vm4, %v366_v31  ;;  %801 = vmatpush3.bf16.msk.msra.mxu0 %vm961_vm12, %v865_v34  ;;  %vm188_vm5 = vmand %vm164_vm14, %vm177_vm1  ;;  %vm167_vm14 = vcmp.ge.s32.totalorder %v153_v39, %v931_v17  ;;  %vm180_vm1 = vcmp.lt.s32.totalorder %v153_v39, %v945_v25  ;;  %v602_v39 = vld [vmem:[%s1131_s2] sm:$0xff] }
   0xf   :  { %819 = vmatprep.subr.msk.bf16.mxu1 %vm961_vm12, %v865_v34  ;;  %vm802_vm6 = vmpackc.low %vm188_vm5, %vm187_vm3  ;;  %vm181_vm3 = vcmp.lt.s32.totalorder %v154_v40, %v945_v25  ;;  %v611_v40 = vld [vmem:[%s1130_s3 + $0x8] sm:$0xff] }
  0x10   :  { %821 = vmatpush3.bf16.msk.msra.mxu1 %vm961_vm12, %v865_v34  ;;  %803 = vmatprep.subr.msk.bf16.mxu0 %vm802_vm6, %v865_v34  ;;  %vm189_vm11 = vmand %vm165_vm7, %vm178_vm9  ;;  %vm170_vm9 = vcmp.ge.s32.totalorder %v156_v42, %v931_v17 }
  0x11   :  { %768 = vmatmul.mubr.msk.f32.gmra.mrb[2].mxu1 %vm114_vm4, %v367_v33  ;;  %823 = vmatprep.subr.msk.bf16.mxu1 %vm802_vm6, %v865_v34  ;;  %vm190_vm12 = vmand %vm166_vm8, %vm179_vm10  ;;  %vm169_vm8 = vcmp.ge.s32.totalorder %v155_v41, %v931_v17  ;;  %vm182_vm10 = vcmp.lt.s32.totalorder %v155_v41, %v945_v25 }
  0x12   :  { %805 = vmatpush3.bf16.msk.msra.mxu0 %vm802_vm6, %v865_v34  ;;  %vm806_vm13 = vmpackc.low %vm190_vm12, %vm189_vm11  ;;  %vm183_vm11 = vcmp.lt.s32.totalorder %v156_v42, %v945_v25 }
  0x13   :  { %807 = vmatprep.subr.msk.bf16.mxu0 %vm806_vm13, %v865_v34  ;;  %vm191_vm5 = vmand %vm167_vm14, %vm180_vm1  ;;  %vm171_vm14 = vcmp.ge.s32.totalorder %v157_v43, %v931_v17 }
  0x14   :  { %825 = vmatpush3.bf16.msk.msra.mxu1 %vm802_vm6, %v865_v34  ;;  %vm192_vm7 = vmand %vm168_vm15, %vm181_vm3 }
  0x15   :  { %827 = vmatprep.subr.msk.bf16.mxu1 %vm806_vm13, %v865_v34  ;;  %vm810_vm6 = vmpackc.low %vm192_vm7, %vm191_vm5 }
  0x16   :  { %809 = vmatpush3.bf16.msk.msra.mxu0 %vm806_vm13, %v865_v34  ;;  %vm193_vm12 = vmand %vm169_vm8, %vm182_vm10 }
  0x17   :  { %811 = vmatprep.subr.msk.bf16.mxu0 %vm810_vm6, %v865_v34  ;;  %vm194_vm15 = vmand %vm170_vm9, %vm183_vm11 }
  0x18   :  { %829 = vmatpush3.bf16.msk.msra.mxu1 %vm806_vm13, %v865_v34  ;;  %vm184_vm13 = vcmp.lt.s32.totalorder %v157_v43, %v945_v25  ;;  %vm814_vm1 = vmpackc.low %vm194_vm15, %vm193_vm12  ;;  %v610_v43 = vld [vmem:[%s1130_s3] sm:$0xff] }
  0x19   :  { %831 = vmatprep.subr.msk.bf16.mxu1 %vm810_vm6, %v865_v34  ;;  %vm195_vm3 = vmand %vm171_vm14, %vm184_vm13 }
  0x1a   :  { %813 = vmatpush3.bf16.msk.msra.mxu0 %vm810_vm6, %v865_v34  ;;  %v658_v44 = vsel %vm195_vm3, 1.0, %v864_v29 }
  0x1b   :  { %815 = vmatprep.subr.msk.bf16.mxu0 %vm814_vm1, %v865_v34 }
  0x1c   :  { %833 = vmatpush3.bf16.msk.msra.mxu1 %vm810_vm6, %v865_v34 }
  0x1d   :  { %835 = vmatprep.subr.msk.bf16.mxu1 %vm814_vm1, %v865_v34 }
  0x1e   :  { %817 = vmatpush3.bf16.msk.msra.mxu0 %vm814_vm1, %v865_v34 }
  0x1f   :  { %754 = vmatprep.subr.msk.mxu0 %vm263_vm2, %v658_v44 }
  0x20   :  { %837 = vmatpush3.bf16.msk.msra.mxu1 %vm814_vm1, %v865_v34 }
  0x21   :  { %790 = vmatprep.subr.msk.mxu1 %vm263_vm2, %v658_v44 }
  0x22   :  { %755 = vmatpush3.msk.msra.mxu0 %vm263_vm2, %v658_v44 }
  0x24   :  { %791 = vmatpush3.msk.msra.mxu1 %vm263_vm2, %v658_v44 }
  0x90   :  { %v1028_v45 = vpop.xlane.xlu0 %228  ;;  %v1030_v46 = vpop.xlane.xlu1 %234 }
  0x91   :  { %v239_v47 = vsub.f32 %v889_v1, %v1028_v45  ;;  %v241_v48 = vsub.f32 %v894_v2, %v1030_v46 }
  0x93   :  { %v243_v49 = vmul.f32 1.442695, %v239_v47  ;;  %v247_v50 = vmul.f32 1.442695, %v241_v48  ;;  %v605_v48 = vld [vmem:[%s1131_s2 + $0x18] sm:$0xff] }
  0x94   :  { %v1036_v51 = vpop.xlane.xlu0 %231  ;;  %v1038_v52 = vpop.xlane.xlu1 %237 }
  0x95   :  { %848 = vpow2.f32 %v243_v49  ;;  %v240_v53 = vsub.f32 %v899_v3, %v1036_v51  ;;  %v242_v54 = vsub.f32 %v910_v7, %v1038_v52 }
  0x96   :  { %850 = vpow2.f32 %v247_v50 }
  0x97   :  { %v245_v55 = vmul.f32 1.442695, %v240_v53  ;;  %v249_v56 = vmul.f32 1.442695, %v242_v54  ;;  %v604_v54 = vld [vmem:[%s1131_s2 + $0x10] sm:$0xff] }
  0x99   :  { %852 = vpow2.f32 %v245_v55 }
  0x9a   :  { %854 = vpow2.f32 %v249_v56 }
  0x9f   :  { %v849_v57 = vpop.eup %848 }
  0xa0   :  { %756 = vmatprep.mubr.msk.f32.mxu0 %vm226_vm0, %v849_v57  ;;  %v851_v58 = vpop.eup %850 }
  0xa3   :  { %v853_v59 = vpop.eup %852 }
  0xa4   :  { %757 = vmatmul.mubr.msk.f32.vlgmr.msra.gmra.mrb[0].mxu0 %vm226_vm0, %v853_v59  ;;  %v855_v60 = vpop.eup %854 }
  0xa5   :  { %759 = vmatprep.mubr.msk.f32.mxu0 %vm226_vm0, %v851_v58 }
  0xa8   :  { %760 = vmatmul.mubr.msk.f32.gmra.mrb[2].mxu0 %vm226_vm0, %v855_v60 }
  0xe0   :  { %v766_v61 = vpop.f32.mrb[0].mxu1 }
  0xe1   :  { %v840_v62 = vtrunc.f32 %v766_v61  ;;  %v450_v63 = vpop.f32.mrb[1].mxu1 }
  0xe2   :  { %v838_v0 = vtrunc.f32 %v450_v63 }
  0xe3   :  { %v841_v4 = vcvt.f32.s32 %v840_v62 }
  0xe4   :  { %v839_v5 = vcvt.f32.s32 %v838_v0  ;;  %v769_v6 = vpop.f32.mrb[2].mxu1 }
  0xe5   :  { %vm474_vm2 = vcmp.eq.s32.totalorder %v914_v9, %v841_v4  ;;  %v844_v8 = vtrunc.f32 %v769_v6  ;;  %v460_v10 = vpop.f32.mrb[3].mxu1 }
  0xe6   :  { %v681_v11 = vsel %vm474_vm2, 1.0, %v864_v29  ;;  %vm473_vm5 = vcmp.eq.s32.totalorder %v914_v9, %v839_v5  ;;  %v842_v12 = vtrunc.f32 %v460_v10 }
  0xe7   :  { %v680_v13 = vsel %vm473_vm5, 1.0, %v864_v29  ;;  %v845_v14 = vcvt.f32.s32 %v844_v8  ;;  %v486_v17 = vmul.f32 %v681_v11, %v899_v3 }
  0xe8   :  { %v485_v15 = vmul.f32 %v680_v13, %v889_v1  ;;  %v843_v16 = vcvt.f32.s32 %v842_v12 }
  0xe9   :  { %vm476_vm7 = vcmp.eq.s32.totalorder %v914_v9, %v845_v14 }
  0xea   :  { %v683_v18 = vsel %vm476_vm7, 1.0, %v864_v29  ;;  %vm475_vm6 = vcmp.eq.s32.totalorder %v914_v9, %v843_v16  ;;  %792 = vmatprep.mubr.msk.f32.mxu1 %vm226_vm0, %v485_v15 }
  0xeb   :  { %v682_v19 = vsel %vm475_vm6, 1.0, %v864_v29  ;;  %793 = vmatmul.mubr.msk.f32.vlgmr.msra.gmra.mrb[4].mxu1 %vm226_vm0, %v486_v17  ;;  %v488_v21 = vmul.f32 %v683_v18, %v910_v7 }
  0xec   :  { %v487_v20 = vmul.f32 %v682_v19, %v894_v2 }
  0xee   :  { %795 = vmatprep.mubr.msk.f32.mxu1 %vm226_vm0, %v487_v20 }
  0xef   :  { %796 = vmatmul.mubr.msk.f32.gmra.mrb[6].mxu1 %vm226_vm0, %v488_v21 }
 0x177   :  { %v758_v1 = vpop.f32.mrb[0].mxu0 }
 0x178   :  { %v333_v2 = vpop.f32.mrb[1].mxu0  ;;  %v353_v9 = vmax.f32 %v758_v1, 1e-30 }
 0x179   :  { %v352_v22 = vmax.f32 %v333_v2, 1e-30 }
 0x17a   :  { %856 = vlog2.f32 %v353_v9 }
 0x17b   :  { %v761_v3 = vpop.f32.mrb[2].mxu0  ;;  %858 = vlog2.f32 %v352_v22 }
 0x17c   :  { %v343_v7 = vpop.f32.mrb[3].mxu0  ;;  %v355_v23 = vmax.f32 %v761_v3, 1e-30 }
 0x17d   :  { %v354_v24 = vmax.f32 %v343_v7, 1e-30 }
 0x17e   :  { %860 = vlog2.f32 %v355_v23 }
 0x17f   :  { %862 = vlog2.f32 %v354_v24 }
 0x184   :  { %v857_v25 = vpop.eup %856 }
 0x185   :  { %v859_v26 = vpop.eup %858  ;;  %v589_v27 = vmul.f32 0.6931472, %v857_v25 }
 0x186   :  { %v587_v30 = vmul.f32 0.6931472, %v859_v26 }
 0x187   :  { %v595_v29 = vadd.f32 %v589_v27, %v1036_v51 }
 0x188   :  { %v861_v28 = vpop.eup %860  ;;  %v594_v36 = vadd.f32 %v587_v30, %v1028_v45 }
 0x189   :  { %v863_v31 = vpop.eup %862  ;;  %v593_v32 = vmul.f32 0.6931472, %v861_v28 }
 0x18a   :  { %v591_v33 = vmul.f32 0.6931472, %v863_v31 }
 0x18b   :  { %v597_v44 = vadd.f32 %v593_v32, %v1038_v52  ;;  %v613_v52 = vld [vmem:[%s1130_s3 + $0x18] sm:$0xff] }
 0x18c   :  { %v596_v49 = vadd.f32 %v591_v33, %v1030_v46  ;;  %v612_v46 = vld [vmem:[%s1130_s3 + $0x10] sm:$0xff] }
 0x1be   :  { %v794_v34 = vpop.f32.mrb[4].mxu1 }
 0x1bf   :  { %v599_v37 = vsub.f32 %v595_v29, %v794_v34  ;;  %v567_v38 = vpop.f32.mrb[5].mxu1 }
 0x1c0   :  { %v598_v41 = vsub.f32 %v594_v36, %v567_v38 }
 0x1c1   :  { %v607_v42 = vmul.f32 %v603_v35, %v599_v37 }
 0x1c2   :  { %v606_v47 = vmul.f32 %v602_v39, %v598_v41  ;;  %v797_v45 = vpop.f32.mrb[6].mxu1 }
 0x1c3   :  { %v619_v50 = vadd.f32 %v611_v40, %v607_v42  ;;  %v601_v51 = vsub.f32 %v597_v44, %v797_v45  ;;  %v577_v53 = vpop.f32.mrb[7].mxu1 }
 0x1c4   :  { %v618_v55 = vadd.f32 %v610_v43, %v606_v47  ;;  %v600_v56 = vsub.f32 %v596_v49, %v577_v53 }
 0x1c5   :  { %623 = vst.msk [vmem:[%s1130_s3 + $0x8] sm:$0xff] %vm114_vm4, %v619_v50  ;;  %v609_v57 = vmul.f32 %v605_v48, %v601_v51 }
 0x1c6   :  { %622 = vst.msk [vmem:[%s1130_s3] sm:$0xff] %vm114_vm4, %v618_v55  ;;  %v608_v58 = vmul.f32 %v604_v54, %v600_v56 }
 0x1c7   :  { %v621_v59 = vadd.f32 %v613_v52, %v609_v57 }
 0x1c8   :  { %v620_v60 = vadd.f32 %v612_v46, %v608_v58 }
 0x1c9   :  { %625 = vst.msk [vmem:[%s1130_s3 + $0x18] sm:$0xff] %vm114_vm4, %v621_v59 }
 0x1ca   :  { %624 = vst.msk [vmem:[%s1130_s3 + $0x10] sm:$0xff] %vm114_vm4, %v620_v60 }

</bundles_post_ra>
